<compile_context>
chip_gen: v7x
topology: tpu7x:2x2x1
jax: 0.10.0
libtpu: 0.0.40
codegen_flags: <defaults>
</compile_context>

<pallas_src>
import functools
import math

import jax
import jax.numpy as jnp
from jax.experimental import pallas as pl
from jax.experimental.pallas import tpu as pltpu


CFG = dict(
    vocab_size=100,
    hidden=32,
    num_layers=2,
    num_heads=4,
    intermediate=64,
    max_pos=16,
    type_vocab=2,
    output_dim=1,
)

_LN_EPS = 1e-12
_GELU_C = 0.7978845608028654  # sqrt(2/pi)
_OUT_PAD = 128                # lane-dense padded width of the fc-head output


# ----------------------------- fused Pallas kernel -----------------------------

def _bert_fused_kernel(
    x_ref,                      # (S, H)   summed embeddings for this batch row, f32
    emb_g_ref, emb_b_ref,       # (1, H)   embedding LayerNorm
    wqkv_ref, bqkv_ref,         # (H, 3H) bf16, (1, 3H) f32   fused QKV projection
    wo_ref, bo_ref,             # (H, H)  bf16, (1, H)  f32   attention out proj
    ln1_g_ref, ln1_b_ref,       # (1, H)   post-attention LayerNorm
    wf1_ref, bf1_ref,           # (H, I)  bf16, (1, I)  f32   FFN in
    wf2_ref, bf2_ref,           # (I, H)  bf16, (1, H)  f32   FFN out
    ln2_g_ref, ln2_b_ref,       # (1, H)   post-FFN LayerNorm
    wp_ref, bp_ref,             # (H, H)  bf16, (1, H)  f32   pooler
    wfc_ref, bfc_ref,           # (H, OP) bf16, (1, OP) f32   fc head (lane-padded)
    out_ref,                    # (8, OP)  f32
    h_ref,                      # VMEM scratch (S, H) f32 — resident residual stream
    *, S, H, nh):
    l = pl.program_id(1)
    num_layers = pl.num_programs(1)
    dh = H // nh
    scale = 1.0 / math.sqrt(dh)

    def mm(x, w_bf16):
        # bf16 operands on the MXU, f32 accumulation (weights arrive pre-cast).
        return jnp.dot(x.astype(jnp.bfloat16), w_bf16,
                       preferred_element_type=jnp.float32)

    def layernorm(x, g, b):
        # Elementwise math stays in f32 (v5e VPU/EUP have no bf16 path).
        mu = jnp.mean(x, axis=-1, keepdims=True)
        var = jnp.mean((x - mu) ** 2, axis=-1, keepdims=True)
        return (x - mu) * jax.lax.rsqrt(var + _LN_EPS) * g + b

    # --- embedding LayerNorm: once per batch row, before layer 0 ---
    @pl.when(l == 0)
    def _():
        h_ref[...] = layernorm(x_ref[...], emb_g_ref[...], emb_b_ref[...])

    x = h_ref[...]                                                   # (S, H) f32

    # --- one encoder layer (this layer's weights streamed in by BlockSpec) ---
    # Fused QKV projection: one MXU pass with a lane-dense 3H-wide output.
    qkv = mm(x, wqkv_ref[...]) + bqkv_ref[...]                       # (S, 3H)

    # Split heads onto a leading batch axis using static lane slices + stack
    # (concatenate-based; avoids minor-dim reshapes/transposes in Mosaic).
    def split_heads(t):                                              # (S,H)->(nh,S,dh)
        return jnp.stack([t[:, h * dh:(h + 1) * dh] for h in range(nh)], axis=0)

    q = split_heads(qkv[:, 0:H])
    k = split_heads(qkv[:, H:2 * H])
    v = split_heads(qkv[:, 2 * H:3 * H])

    # Batched over all heads: ONE score einsum and ONE context einsum per layer.
    # NOTE: 'hqd,hkd->hqk' contracts both operands' minor dims, so Mosaic still
    # relays one operand into MXU weight layout — that rides the XLU slot.
    # No attention mask: the reference module calls bert(x) with the default
    # all-ones mask, so masking is a no-op here.
    s = jnp.einsum('hqd,hkd->hqk',
                   q.astype(jnp.bfloat16), k.astype(jnp.bfloat16),
                   preferred_element_type=jnp.float32) * scale       # (nh, S, S)
    m = jnp.max(s, axis=-1, keepdims=True)
    p = jnp.exp(s - m)
    p = p * pl.reciprocal(jnp.sum(p, axis=-1, keepdims=True), approx=True)  # EUP
    ctx = jnp.einsum('hqk,hkd->hqd',
                     p.astype(jnp.bfloat16), v.astype(jnp.bfloat16),
                     preferred_element_type=jnp.float32)             # (nh, S, dh)

    # Re-merge heads along lanes, then ONE K=H output projection (full MXU
    # depth) with a single bias add — replaces nh K=dh accumulation passes.
    ctx = jnp.concatenate([ctx[h] for h in range(nh)], axis=-1)      # (S, H)
    attn = mm(ctx, wo_ref[...]) + bo_ref[...]

    x = layernorm(attn + x, ln1_g_ref[...], ln1_b_ref[...])

    # FFN with GELU (tanh approximation).
    # TODO(synk): exact erf-GELU if bit-exact parity with HF BERT is required.
    ff = mm(x, wf1_ref[...]) + bf1_ref[...]
    ff = 0.5 * ff * (1.0 + jnp.tanh(_GELU_C * (ff + 0.044715 * ff * ff * ff)))
    ff = mm(ff, wf2_ref[...]) + bf2_ref[...]

    x = layernorm(ff + x, ln2_g_ref[...], ln2_b_ref[...])
    h_ref[...] = x

    # --- after the last layer: pooler (tanh on the CLS token) + fc head ---
    @pl.when(l == num_layers - 1)
    def _():
        cls = x[0:1, :]                                              # (1, H)
        pooled = jnp.tanh(mm(cls, wp_ref[...]) + bp_ref[...])        # (1, H)
        logits = mm(pooled, wfc_ref[...]) + bfc_ref[...]             # (1, OP)
        out_ref[...] = jnp.broadcast_to(logits, out_ref.shape).astype(out_ref.dtype)


# ----------------------------- params & wrapper -----------------------------

def init_params(key, cfg):
    H, I, L = cfg["hidden"], cfg["intermediate"], cfg["num_layers"]
    O = cfg["output_dim"]
    ks = iter(jax.random.split(key, 16))

    def w(shape):
        return jax.random.normal(next(ks), shape, jnp.float32) * 0.02

    return dict(
        word_emb=w((cfg["vocab_size"], H)),
        pos_emb=w((cfg["max_pos"], H)),
        type_emb=w((cfg["type_vocab"], H)),
        emb_g=jnp.ones((1, H), jnp.float32),
        emb_b=jnp.zeros((1, H), jnp.float32),
        # per-layer weights stacked on a leading L axis (streamed via BlockSpec)
        wqkv=w((L, H, 3 * H)),
        bqkv=jnp.zeros((L, 1, 3 * H), jnp.float32),
        wo=w((L, H, H)),
        bo=jnp.zeros((L, 1, H), jnp.float32),
        ln1_g=jnp.ones((L, 1, H), jnp.float32),
        ln1_b=jnp.zeros((L, 1, H), jnp.float32),
        wf1=w((L, H, I)),
        bf1=jnp.zeros((L, 1, I), jnp.float32),
        wf2=w((L, I, H)),
        bf2=jnp.zeros((L, 1, H), jnp.float32),
        ln2_g=jnp.ones((L, 1, H), jnp.float32),
        ln2_b=jnp.zeros((L, 1, H), jnp.float32),
        wp=w((H, H)),
        bp=jnp.zeros((1, H), jnp.float32),
        wfc=w((H, O)),
        bfc=jnp.zeros((1, O), jnp.float32),
    )


def prepare_params(params, cfg):
    """Kernel-ready operands: matmul weights pre-cast to bf16 (halves weight DMA
    bytes and VMEM footprint), fc head lane-padded to a 128-wide slab."""
    H, O = cfg["hidden"], cfg["output_dim"]
    p = dict(params)
    for name in ("wqkv", "wo", "wf1", "wf2", "wp"):
        p[name] = params[name].astype(jnp.bfloat16)
    wfc = jnp.zeros((H, _OUT_PAD), jnp.float32).at[:, :O].set(params["wfc"])
    bfc = jnp.zeros((1, _OUT_PAD), jnp.float32).at[:, :O].set(params["bfc"])
    p["wfc"] = wfc.astype(jnp.bfloat16)
    p["bfc"] = bfc
    return p


def bert_forward(params, input_ids, cfg):
    B, S = input_ids.shape
    H, I = cfg["hidden"], cfg["intermediate"]
    L, nh, O = cfg["num_layers"], cfg["num_heads"], cfg["output_dim"]

    # Embedding gather + sum stays in JAX glue (data-dependent gather).
    # TODO(synk): fold the gather into the kernel via
    # PrefetchScalarGridSpec(num_scalar_prefetch=1) + a pl.Element row-gather
    # BlockSpec on word_emb to avoid the (B, S, H) HBM round trip.
    we = jnp.take(params["word_emb"], input_ids, axis=0)             # (B, S, H)
    pe = params["pos_emb"][:S][None, :, :]                           # (1, S, H)
    te = params["type_emb"][0][None, None, :]                        # token_type_id = 0
    x = (we + pe + te).astype(jnp.float32)                           # (B, S, H)

    kernel = functools.partial(_bert_fused_kernel, S=S, H=H, nh=nh)

    def layer_spec(d0, d1):     # per-layer weight: new block each layer step
        return pl.BlockSpec((None, d0, d1), lambda b, l: (l, 0, 0))

    def shared_spec(d0, d1):    # shared weight: resident across the whole grid
        return pl.BlockSpec((d0, d1), lambda b, l: (0, 0))

    grid_spec = pltpu.PrefetchScalarGridSpec(
        num_scalar_prefetch=0,
        grid=(B, L),   # batch rows (parallel) x encoder layers (sequential)
        in_specs=[
            pl.BlockSpec((None, S, H), lambda b, l: (b, 0, 0)),      # x embeddings
            shared_spec(1, H), shared_spec(1, H),                    # emb LN g, b
            layer_spec(H, 3 * H), layer_spec(1, 3 * H),              # wqkv, bqkv
            layer_spec(H, H), layer_spec(1, H),                      # wo, bo
            layer_spec(1, H), layer_spec(1, H),                      # ln1 g, b
            layer_spec(H, I), layer_spec(1, I),                      # wf1, bf1
            layer_spec(I, H), layer_spec(1, H),                      # wf2, bf2
            layer_spec(1, H), layer_spec(1, H),                      # ln2 g, b
            shared_spec(H, H), shared_spec(1, H),                    # pooler w, b
            shared_spec(H, _OUT_PAD), shared_spec(1, _OUT_PAD),      # fc w, b (padded)
        ],
        out_specs=pl.BlockSpec((None, 8, _OUT_PAD), lambda b, l: (b, 0, 0)),
        scratch_shapes=[pltpu.VMEM((S, H), jnp.float32)],            # residual stream
    )

    out = pl.pallas_call(
        kernel,
        grid_spec=grid_spec,
        out_shape=jax.ShapeDtypeStruct((B, 8, _OUT_PAD), jnp.float32),
        compiler_params=pltpu.CompilerParams(
            # Batch axis shards across v7x's two TensorCores (no-op on v5e/v6e);
            # layer axis is the sequential weight-streaming axis.
            dimension_semantics=("parallel", "arbitrary"),
            # Budget fits v7x's 64 MiB VMEM; plenty on v5e/v6e's 128 MiB.
            # TODO(synk): at bert-base sizes also tile the S row dim and pick
            # this per generation (v6e can go toward ~96 MiB for bigger tiles).
            vmem_limit_bytes=48 * 1024 * 1024,
        ),
    )(x,
      params["emb_g"], params["emb_b"],
      params["wqkv"], params["bqkv"], params["wo"], params["bo"],
      params["ln1_g"], params["ln1_b"],
      params["wf1"], params["bf1"], params["wf2"], params["bf2"],
      params["ln2_g"], params["ln2_b"],
      params["wp"], params["bp"], params["wfc"], params["bfc"])

    # Lane-padded, row-broadcast kernel output -> (B, output_dim)
    return out[:, 0, :O]


# ----------------------------- main -----------------------------

if __name__ == "__main__":
    key = jax.random.PRNGKey(0)
    pkey, dkey = jax.random.split(key)

    params = prepare_params(init_params(pkey, CFG), CFG)

    B, S = 2, 8
    input_ids = jax.random.randint(dkey, (B, S), 0, CFG["vocab_size"], dtype=jnp.int32)

    fwd = jax.jit(functools.partial(bert_forward, cfg=CFG))
    out = fwd(params, input_ids)
    jax.block_until_ready(out)

    assert out.shape == (B, CFG["output_dim"]), out.shape
    assert bool(jnp.all(jnp.isfinite(out)))
    print("KERNEL_OK")
</pallas_src>

<mosaic_0001>
module attributes {stable_mosaic.version = 11 : i64} {
  func.func @_bert_fused_kernel(%arg0: i32, %arg1: i32, %arg2: memref<1x8x32xf32, #tpu.memory_space<vmem>>, %arg3: memref<1x32xf32, #tpu.memory_space<vmem>>, %arg4: memref<1x32xf32, #tpu.memory_space<vmem>>, %arg5: memref<1x32x96xbf16, #tpu.memory_space<vmem>>, %arg6: memref<1x1x96xf32, #tpu.memory_space<vmem>>, %arg7: memref<1x32x32xbf16, #tpu.memory_space<vmem>>, %arg8: memref<1x1x32xf32, #tpu.memory_space<vmem>>, %arg9: memref<1x1x32xf32, #tpu.memory_space<vmem>>, %arg10: memref<1x1x32xf32, #tpu.memory_space<vmem>>, %arg11: memref<1x32x64xbf16, #tpu.memory_space<vmem>>, %arg12: memref<1x1x64xf32, #tpu.memory_space<vmem>>, %arg13: memref<1x64x32xbf16, #tpu.memory_space<vmem>>, %arg14: memref<1x1x32xf32, #tpu.memory_space<vmem>>, %arg15: memref<1x1x32xf32, #tpu.memory_space<vmem>>, %arg16: memref<1x1x32xf32, #tpu.memory_space<vmem>>, %arg17: memref<32x32xbf16, #tpu.memory_space<vmem>>, %arg18: memref<1x32xf32, #tpu.memory_space<vmem>>, %arg19: memref<32x128xbf16, #tpu.memory_space<vmem>>, %arg20: memref<1x128xf32, #tpu.memory_space<vmem>>, %arg21: memref<1x8x128xf32, #tpu.memory_space<vmem>>, %arg22: memref<8x32xf32, #tpu.memory_space<vmem>>) attributes {dimension_semantics = [#tpu.dimension_semantics<parallel>, #tpu.dimension_semantics<arbitrary>], iteration_bounds = array<i64: 2, 2>, scalar_prefetch = 0 : i64, scratch_operands = 1 : i64, tpu.core_type = #tpu.core_type<tc>, window_params = [{transform_indices = @transform_0, window_bounds = array<i64: 1, 8, 32>}, {pipeline_mode = #tpu.pipeline_mode<synchronous>, transform_indices = @transform_1, window_bounds = array<i64: 1, 32>}, {pipeline_mode = #tpu.pipeline_mode<synchronous>, transform_indices = @transform_2, window_bounds = array<i64: 1, 32>}, {transform_indices = @transform_3, window_bounds = array<i64: 1, 32, 96>}, {transform_indices = @transform_4, window_bounds = array<i64: 1, 1, 96>}, {transform_indices = @transform_5, window_bounds = array<i64: 1, 32, 32>}, {transform_indices = @transform_6, window_bounds = array<i64: 1, 1, 32>}, {transform_indices = @transform_7, window_bounds = array<i64: 1, 1, 32>}, {transform_indices = @transform_8, window_bounds = array<i64: 1, 1, 32>}, {transform_indices = @transform_9, window_bounds = array<i64: 1, 32, 64>}, {transform_indices = @transform_10, window_bounds = array<i64: 1, 1, 64>}, {transform_indices = @transform_11, window_bounds = array<i64: 1, 64, 32>}, {transform_indices = @transform_12, window_bounds = array<i64: 1, 1, 32>}, {transform_indices = @transform_13, window_bounds = array<i64: 1, 1, 32>}, {transform_indices = @transform_14, window_bounds = array<i64: 1, 1, 32>}, {pipeline_mode = #tpu.pipeline_mode<synchronous>, transform_indices = @transform_15, window_bounds = array<i64: 32, 32>}, {pipeline_mode = #tpu.pipeline_mode<synchronous>, transform_indices = @transform_16, window_bounds = array<i64: 1, 32>}, {pipeline_mode = #tpu.pipeline_mode<synchronous>, transform_indices = @transform_17, window_bounds = array<i64: 32, 128>}, {pipeline_mode = #tpu.pipeline_mode<synchronous>, transform_indices = @transform_18, window_bounds = array<i64: 1, 128>}, {transform_indices = @transform_19, window_bounds = array<i64: 1, 8, 128>}]} {
    %c0_i32 = arith.constant 0 : i32
    %0 = arith.cmpi eq, %arg1, %c0_i32 : i32
    %1 = arith.extui %0 : i1 to i32
    %c0_i32_0 = arith.constant 0 : i32
    %2 = arith.cmpi ne, %1, %c0_i32_0 : i32
    scf.if %2 {
      %c0_63 = arith.constant 0 : index
      %c0_64 = arith.constant 0 : index
      %c0_65 = arith.constant 0 : index
      %164 = vector.load %arg2[%c0_63, %c0_64, %c0_65] : memref<1x8x32xf32, #tpu.memory_space<vmem>>, vector<1x8x32xf32>
      %165 = vector.shape_cast %164 : vector<1x8x32xf32> to vector<8x32xf32>
      %c0_66 = arith.constant 0 : index
      %c0_67 = arith.constant 0 : index
      %166 = vector.load %arg3[%c0_66, %c0_67] : memref<1x32xf32, #tpu.memory_space<vmem>>, vector<1x32xf32>
      %c0_68 = arith.constant 0 : index
      %c0_69 = arith.constant 0 : index
      %167 = vector.load %arg4[%c0_68, %c0_69] : memref<1x32xf32, #tpu.memory_space<vmem>>, vector<1x32xf32>
      %cst_70 = arith.constant dense<0.000000e+00> : vector<8xf32>
      %168 = vector.multi_reduction <add>, %165, %cst_70 [1] : vector<8x32xf32> to vector<8xf32>
      %169 = vector.shape_cast %168 : vector<8xf32> to vector<8x1xf32>
      %cst_71 = arith.constant 3.200000e+01 : f32
      %170 = vector.broadcast %cst_71 : f32 to vector<8x1xf32>
      %171 = arith.divf %169, %170 : vector<8x1xf32>
      %172 = vector.broadcast %171 : vector<8x1xf32> to vector<8x32xf32>
      %173 = arith.subf %165, %172 : vector<8x32xf32>
      %174 = arith.mulf %173, %173 : vector<8x32xf32>
      %cst_72 = arith.constant dense<0.000000e+00> : vector<8xf32>
      %175 = vector.multi_reduction <add>, %174, %cst_72 [1] : vector<8x32xf32> to vector<8xf32>
      %176 = vector.shape_cast %175 : vector<8xf32> to vector<8x1xf32>
      %cst_73 = arith.constant 3.200000e+01 : f32
      %177 = vector.broadcast %cst_73 : f32 to vector<8x1xf32>
      %178 = arith.divf %176, %177 : vector<8x1xf32>
      %179 = vector.broadcast %171 : vector<8x1xf32> to vector<8x32xf32>
      %180 = arith.subf %165, %179 : vector<8x32xf32>
      %cst_74 = arith.constant 9.99999996E-13 : f32
      %181 = vector.broadcast %cst_74 : f32 to vector<8x1xf32>
      %182 = arith.addf %178, %181 : vector<8x1xf32>
      %183 = math.rsqrt %182 : vector<8x1xf32>
      %184 = vector.broadcast %183 : vector<8x1xf32> to vector<8x32xf32>
      %185 = arith.mulf %180, %184 : vector<8x32xf32>
      %186 = vector.broadcast %166 : vector<1x32xf32> to vector<8x32xf32>
      %187 = arith.mulf %185, %186 : vector<8x32xf32>
      %188 = vector.broadcast %167 : vector<1x32xf32> to vector<8x32xf32>
      %189 = arith.addf %187, %188 : vector<8x32xf32>
      %c0_75 = arith.constant 0 : index
      %c0_76 = arith.constant 0 : index
      %190 = vector.load %arg22[%c0_75, %c0_76] : memref<8x32xf32, #tpu.memory_space<vmem>>, vector<8x32xf32>
      tpu.vector_store %arg22[%c0_75, %c0_76], %189 {strides = array<i32>} : memref<8x32xf32, #tpu.memory_space<vmem>>, vector<8x32xf32>,
    } else {
    }
    %c0 = arith.constant 0 : index
    %c0_1 = arith.constant 0 : index
    %3 = vector.load %arg22[%c0, %c0_1] : memref<8x32xf32, #tpu.memory_space<vmem>>, vector<8x32xf32>
    %c0_2 = arith.constant 0 : index
    %c0_3 = arith.constant 0 : index
    %c0_4 = arith.constant 0 : index
    %4 = vector.load %arg5[%c0_2, %c0_3, %c0_4] : memref<1x32x96xbf16, #tpu.memory_space<vmem>>, vector<1x32x96xbf16>
    %5 = vector.shape_cast %4 : vector<1x32x96xbf16> to vector<32x96xbf16>
    %6 = arith.truncf %3 : vector<8x32xf32> to vector<8x32xbf16>
    %cst = arith.constant dense<0.000000e+00> : vector<8x96xf32>
    %7 = tpu.matmul %6, %5, %cst {dimension_numbers = #tpu.dot_dimension_numbers<[1], [0], [0], [1], [0, 0, 1, 1], [], []>} : vector<8x32xbf16>, vector<32x96xbf16>, vector<8x96xf32> -> vector<8x96xf32>
    %c0_5 = arith.constant 0 : index
    %c0_6 = arith.constant 0 : index
    %c0_7 = arith.constant 0 : index
    %8 = vector.load %arg6[%c0_5, %c0_6, %c0_7] : memref<1x1x96xf32, #tpu.memory_space<vmem>>, vector<1x1x96xf32>
    %9 = vector.shape_cast %8 : vector<1x1x96xf32> to vector<1x96xf32>
    %10 = vector.broadcast %9 : vector<1x96xf32> to vector<8x96xf32>
    %11 = arith.addf %7, %10 : vector<8x96xf32>
    %12 = vector.extract_strided_slice %11 {offsets = [0, 0], sizes = [8, 32], strides = [1, 1]} : vector<8x96xf32> to vector<8x32xf32>
    %13 = vector.extract_strided_slice %12 {offsets = [0, 0], sizes = [8, 8], strides = [1, 1]} : vector<8x32xf32> to vector<8x8xf32>
    %14 = vector.extract_strided_slice %12 {offsets = [0, 8], sizes = [8, 8], strides = [1, 1]} : vector<8x32xf32> to vector<8x8xf32>
    %15 = vector.extract_strided_slice %12 {offsets = [0, 16], sizes = [8, 8], strides = [1, 1]} : vector<8x32xf32> to vector<8x8xf32>
    %16 = vector.extract_strided_slice %12 {offsets = [0, 24], sizes = [8, 8], strides = [1, 1]} : vector<8x32xf32> to vector<8x8xf32>
    %17 = vector.shape_cast %13 : vector<8x8xf32> to vector<1x8x8xf32>
    %18 = vector.shape_cast %14 : vector<8x8xf32> to vector<1x8x8xf32>
    %19 = vector.shape_cast %15 : vector<8x8xf32> to vector<1x8x8xf32>
    %20 = vector.shape_cast %16 : vector<8x8xf32> to vector<1x8x8xf32>
    %21 = tpu.concatenate %17, %18, %19, %20 in 0 : vector<1x8x8xf32>, vector<1x8x8xf32>, vector<1x8x8xf32>, vector<1x8x8xf32> -> vector<4x8x8xf32>
    %22 = vector.extract_strided_slice %11 {offsets = [0, 32], sizes = [8, 32], strides = [1, 1]} : vector<8x96xf32> to vector<8x32xf32>
    %23 = vector.extract_strided_slice %22 {offsets = [0, 0], sizes = [8, 8], strides = [1, 1]} : vector<8x32xf32> to vector<8x8xf32>
    %24 = vector.extract_strided_slice %22 {offsets = [0, 8], sizes = [8, 8], strides = [1, 1]} : vector<8x32xf32> to vector<8x8xf32>
    %25 = vector.extract_strided_slice %22 {offsets = [0, 16], sizes = [8, 8], strides = [1, 1]} : vector<8x32xf32> to vector<8x8xf32>
    %26 = vector.extract_strided_slice %22 {offsets = [0, 24], sizes = [8, 8], strides = [1, 1]} : vector<8x32xf32> to vector<8x8xf32>
    %27 = vector.shape_cast %23 : vector<8x8xf32> to vector<1x8x8xf32>
    %28 = vector.shape_cast %24 : vector<8x8xf32> to vector<1x8x8xf32>
    %29 = vector.shape_cast %25 : vector<8x8xf32> to vector<1x8x8xf32>
    %30 = vector.shape_cast %26 : vector<8x8xf32> to vector<1x8x8xf32>
    %31 = tpu.concatenate %27, %28, %29, %30 in 0 : vector<1x8x8xf32>, vector<1x8x8xf32>, vector<1x8x8xf32>, vector<1x8x8xf32> -> vector<4x8x8xf32>
    %32 = vector.extract_strided_slice %11 {offsets = [0, 64], sizes = [8, 32], strides = [1, 1]} : vector<8x96xf32> to vector<8x32xf32>
    %33 = vector.extract_strided_slice %32 {offsets = [0, 0], sizes = [8, 8], strides = [1, 1]} : vector<8x32xf32> to vector<8x8xf32>
    %34 = vector.extract_strided_slice %32 {offsets = [0, 8], sizes = [8, 8], strides = [1, 1]} : vector<8x32xf32> to vector<8x8xf32>
    %35 = vector.extract_strided_slice %32 {offsets = [0, 16], sizes = [8, 8], strides = [1, 1]} : vector<8x32xf32> to vector<8x8xf32>
    %36 = vector.extract_strided_slice %32 {offsets = [0, 24], sizes = [8, 8], strides = [1, 1]} : vector<8x32xf32> to vector<8x8xf32>
    %37 = vector.shape_cast %33 : vector<8x8xf32> to vector<1x8x8xf32>
    %38 = vector.shape_cast %34 : vector<8x8xf32> to vector<1x8x8xf32>
    %39 = vector.shape_cast %35 : vector<8x8xf32> to vector<1x8x8xf32>
    %40 = vector.shape_cast %36 : vector<8x8xf32> to vector<1x8x8xf32>
    %41 = tpu.concatenate %37, %38, %39, %40 in 0 : vector<1x8x8xf32>, vector<1x8x8xf32>, vector<1x8x8xf32>, vector<1x8x8xf32> -> vector<4x8x8xf32>
    %42 = arith.truncf %21 : vector<4x8x8xf32> to vector<4x8x8xbf16>
    %43 = arith.truncf %31 : vector<4x8x8xf32> to vector<4x8x8xbf16>
    "tpu.trace_start"() <{level = 10 : i32, message = "hqd,hkd->hqk"}> : () -> ()
    %cst_8 = arith.constant dense<0.000000e+00> : vector<4x8x8xf32>
    %44 = tpu.matmul %42, %43, %cst_8 {dimension_numbers = #tpu.dot_dimension_numbers<[2], [2], [1], [1], [0, 0, 0, 1, 1, 1], [0], [0]>} : vector<4x8x8xbf16>, vector<4x8x8xbf16>, vector<4x8x8xf32> -> vector<4x8x8xf32>
    "tpu.trace_stop"() : () -> ()
    %cst_9 = arith.constant 0.353553385 : f32
    %45 = vector.broadcast %cst_9 : f32 to vector<4x8x8xf32>
    %46 = arith.mulf %44, %45 : vector<4x8x8xf32>
    %cst_10 = arith.constant dense<0xFF800000> : vector<4x8xf32>
    %47 = vector.multi_reduction <maximumf>, %46, %cst_10 [2] : vector<4x8x8xf32> to vector<4x8xf32>
    %48 = vector.shape_cast %47 : vector<4x8xf32> to vector<4x8x1xf32>
    %49 = vector.broadcast %48 : vector<4x8x1xf32> to vector<4x8x8xf32>
    %50 = arith.subf %46, %49 : vector<4x8x8xf32>
    %51 = math.exp %50 : vector<4x8x8xf32>
    %cst_11 = arith.constant dense<0.000000e+00> : vector<4x8xf32>
    %52 = vector.multi_reduction <add>, %51, %cst_11 [2] : vector<4x8x8xf32> to vector<4x8xf32>
    %53 = vector.shape_cast %52 : vector<4x8xf32> to vector<4x8x1xf32>
    %54 = tpu.reciprocal %53 {approx = true} : vector<4x8x1xf32> -> vector<4x8x1xf32>
    %55 = vector.broadcast %54 : vector<4x8x1xf32> to vector<4x8x8xf32>
    %56 = arith.mulf %51, %55 : vector<4x8x8xf32>
    %57 = arith.truncf %56 : vector<4x8x8xf32> to vector<4x8x8xbf16>
    %58 = arith.truncf %41 : vector<4x8x8xf32> to vector<4x8x8xbf16>
    "tpu.trace_start"() <{level = 10 : i32, message = "hqk,hkd->hqd"}> : () -> ()
    %cst_12 = arith.constant dense<0.000000e+00> : vector<4x8x8xf32>
    %59 = tpu.matmul %57, %58, %cst_12 {dimension_numbers = #tpu.dot_dimension_numbers<[2], [1], [1], [2], [0, 0, 0, 1, 1, 2], [0], [0]>} : vector<4x8x8xbf16>, vector<4x8x8xbf16>, vector<4x8x8xf32> -> vector<4x8x8xf32>
    "tpu.trace_stop"() : () -> ()
    %60 = vector.extract_strided_slice %59 {offsets = [0, 0, 0], sizes = [1, 8, 8], strides = [1, 1, 1]} : vector<4x8x8xf32> to vector<1x8x8xf32>
    %61 = vector.shape_cast %60 : vector<1x8x8xf32> to vector<8x8xf32>
    %62 = vector.extract_strided_slice %59 {offsets = [1, 0, 0], sizes = [1, 8, 8], strides = [1, 1, 1]} : vector<4x8x8xf32> to vector<1x8x8xf32>
    %63 = vector.shape_cast %62 : vector<1x8x8xf32> to vector<8x8xf32>
    %64 = vector.extract_strided_slice %59 {offsets = [2, 0, 0], sizes = [1, 8, 8], strides = [1, 1, 1]} : vector<4x8x8xf32> to vector<1x8x8xf32>
    %65 = vector.shape_cast %64 : vector<1x8x8xf32> to vector<8x8xf32>
    %66 = vector.extract_strided_slice %59 {offsets = [3, 0, 0], sizes = [1, 8, 8], strides = [1, 1, 1]} : vector<4x8x8xf32> to vector<1x8x8xf32>
    %67 = vector.shape_cast %66 : vector<1x8x8xf32> to vector<8x8xf32>
    %68 = tpu.concatenate %61, %63, %65, %67 in 1 : vector<8x8xf32>, vector<8x8xf32>, vector<8x8xf32>, vector<8x8xf32> -> vector<8x32xf32>
    %c0_13 = arith.constant 0 : index
    %c0_14 = arith.constant 0 : index
    %c0_15 = arith.constant 0 : index
    %69 = vector.load %arg7[%c0_13, %c0_14, %c0_15] : memref<1x32x32xbf16, #tpu.memory_space<vmem>>, vector<1x32x32xbf16>
    %70 = vector.shape_cast %69 : vector<1x32x32xbf16> to vector<32x32xbf16>
    %71 = arith.truncf %68 : vector<8x32xf32> to vector<8x32xbf16>
    %cst_16 = arith.constant dense<0.000000e+00> : vector<8x32xf32>
    %72 = tpu.matmul %71, %70, %cst_16 {dimension_numbers = #tpu.dot_dimension_numbers<[1], [0], [0], [1], [0, 0, 1, 1], [], []>} : vector<8x32xbf16>, vector<32x32xbf16>, vector<8x32xf32> -> vector<8x32xf32>
    %c0_17 = arith.constant 0 : index
    %c0_18 = arith.constant 0 : index
    %c0_19 = arith.constant 0 : index
    %73 = vector.load %arg8[%c0_17, %c0_18, %c0_19] : memref<1x1x32xf32, #tpu.memory_space<vmem>>, vector<1x1x32xf32>
    %74 = vector.shape_cast %73 : vector<1x1x32xf32> to vector<1x32xf32>
    %75 = vector.broadcast %74 : vector<1x32xf32> to vector<8x32xf32>
    %76 = arith.addf %72, %75 : vector<8x32xf32>
    %77 = arith.addf %76, %3 : vector<8x32xf32>
    %c0_20 = arith.constant 0 : index
    %c0_21 = arith.constant 0 : index
    %c0_22 = arith.constant 0 : index
    %78 = vector.load %arg9[%c0_20, %c0_21, %c0_22] : memref<1x1x32xf32, #tpu.memory_space<vmem>>, vector<1x1x32xf32>
    %79 = vector.shape_cast %78 : vector<1x1x32xf32> to vector<1x32xf32>
    %c0_23 = arith.constant 0 : index
    %c0_24 = arith.constant 0 : index
    %c0_25 = arith.constant 0 : index
    %80 = vector.load %arg10[%c0_23, %c0_24, %c0_25] : memref<1x1x32xf32, #tpu.memory_space<vmem>>, vector<1x1x32xf32>
    %81 = vector.shape_cast %80 : vector<1x1x32xf32> to vector<1x32xf32>
    %cst_26 = arith.constant dense<0.000000e+00> : vector<8xf32>
    %82 = vector.multi_reduction <add>, %77, %cst_26 [1] : vector<8x32xf32> to vector<8xf32>
    %83 = vector.shape_cast %82 : vector<8xf32> to vector<8x1xf32>
    %cst_27 = arith.constant 3.200000e+01 : f32
    %84 = vector.broadcast %cst_27 : f32 to vector<8x1xf32>
    %85 = arith.divf %83, %84 : vector<8x1xf32>
    %86 = vector.broadcast %85 : vector<8x1xf32> to vector<8x32xf32>
    %87 = arith.subf %77, %86 : vector<8x32xf32>
    %88 = arith.mulf %87, %87 : vector<8x32xf32>
    %cst_28 = arith.constant dense<0.000000e+00> : vector<8xf32>
    %89 = vector.multi_reduction <add>, %88, %cst_28 [1] : vector<8x32xf32> to vector<8xf32>
    %90 = vector.shape_cast %89 : vector<8xf32> to vector<8x1xf32>
    %cst_29 = arith.constant 3.200000e+01 : f32
    %91 = vector.broadcast %cst_29 : f32 to vector<8x1xf32>
    %92 = arith.divf %90, %91 : vector<8x1xf32>
    %93 = vector.broadcast %85 : vector<8x1xf32> to vector<8x32xf32>
    %94 = arith.subf %77, %93 : vector<8x32xf32>
    %cst_30 = arith.constant 9.99999996E-13 : f32
    %95 = vector.broadcast %cst_30 : f32 to vector<8x1xf32>
    %96 = arith.addf %92, %95 : vector<8x1xf32>
    %97 = math.rsqrt %96 : vector<8x1xf32>
    %98 = vector.broadcast %97 : vector<8x1xf32> to vector<8x32xf32>
    %99 = arith.mulf %94, %98 : vector<8x32xf32>
    %100 = vector.broadcast %79 : vector<1x32xf32> to vector<8x32xf32>
    %101 = arith.mulf %99, %100 : vector<8x32xf32>
    %102 = vector.broadcast %81 : vector<1x32xf32> to vector<8x32xf32>
    %103 = arith.addf %101, %102 : vector<8x32xf32>
    %c0_31 = arith.constant 0 : index
    %c0_32 = arith.constant 0 : index
    %c0_33 = arith.constant 0 : index
    %104 = vector.load %arg11[%c0_31, %c0_32, %c0_33] : memref<1x32x64xbf16, #tpu.memory_space<vmem>>, vector<1x32x64xbf16>
    %105 = vector.shape_cast %104 : vector<1x32x64xbf16> to vector<32x64xbf16>
    %106 = arith.truncf %103 : vector<8x32xf32> to vector<8x32xbf16>
    %cst_34 = arith.constant dense<0.000000e+00> : vector<8x64xf32>
    %107 = tpu.matmul %106, %105, %cst_34 {dimension_numbers = #tpu.dot_dimension_numbers<[1], [0], [0], [1], [0, 0, 1, 1], [], []>} : vector<8x32xbf16>, vector<32x64xbf16>, vector<8x64xf32> -> vector<8x64xf32>
    %c0_35 = arith.constant 0 : index
    %c0_36 = arith.constant 0 : index
    %c0_37 = arith.constant 0 : index
    %108 = vector.load %arg12[%c0_35, %c0_36, %c0_37] : memref<1x1x64xf32, #tpu.memory_space<vmem>>, vector<1x1x64xf32>
    %109 = vector.shape_cast %108 : vector<1x1x64xf32> to vector<1x64xf32>
    %110 = vector.broadcast %109 : vector<1x64xf32> to vector<8x64xf32>
    %111 = arith.addf %107, %110 : vector<8x64xf32>
    %cst_38 = arith.constant 5.000000e-01 : f32
    %112 = vector.broadcast %cst_38 : f32 to vector<8x64xf32>
    %113 = arith.mulf %112, %111 : vector<8x64xf32>
    %cst_39 = arith.constant 4.471500e-02 : f32
    %114 = vector.broadcast %cst_39 : f32 to vector<8x64xf32>
    %115 = arith.mulf %114, %111 : vector<8x64xf32>
    %116 = arith.mulf %115, %111 : vector<8x64xf32>
    %117 = arith.mulf %116, %111 : vector<8x64xf32>
    %118 = arith.addf %111, %117 : vector<8x64xf32>
    %cst_40 = arith.constant 0.797884583 : f32
    %119 = vector.broadcast %cst_40 : f32 to vector<8x64xf32>
    %120 = arith.mulf %119, %118 : vector<8x64xf32>
    %121 = math.tanh %120 : vector<8x64xf32>
    %cst_41 = arith.constant 1.000000e+00 : f32
    %122 = vector.broadcast %cst_41 : f32 to vector<8x64xf32>
    %123 = arith.addf %122, %121 : vector<8x64xf32>
    %124 = arith.mulf %113, %123 : vector<8x64xf32>
    %c0_42 = arith.constant 0 : index
    %c0_43 = arith.constant 0 : index
    %c0_44 = arith.constant 0 : index
    %125 = vector.load %arg13[%c0_42, %c0_43, %c0_44] : memref<1x64x32xbf16, #tpu.memory_space<vmem>>, vector<1x64x32xbf16>
    %126 = vector.shape_cast %125 : vector<1x64x32xbf16> to vector<64x32xbf16>
    %127 = arith.truncf %124 : vector<8x64xf32> to vector<8x64xbf16>
    %cst_45 = arith.constant dense<0.000000e+00> : vector<8x32xf32>
    %128 = tpu.matmul %127, %126, %cst_45 {dimension_numbers = #tpu.dot_dimension_numbers<[1], [0], [0], [1], [0, 0, 1, 1], [], []>} : vector<8x64xbf16>, vector<64x32xbf16>, vector<8x32xf32> -> vector<8x32xf32>
    %c0_46 = arith.constant 0 : index
    %c0_47 = arith.constant 0 : index
    %c0_48 = arith.constant 0 : index
    %129 = vector.load %arg14[%c0_46, %c0_47, %c0_48] : memref<1x1x32xf32, #tpu.memory_space<vmem>>, vector<1x1x32xf32>
    %130 = vector.shape_cast %129 : vector<1x1x32xf32> to vector<1x32xf32>
    %131 = vector.broadcast %130 : vector<1x32xf32> to vector<8x32xf32>
    %132 = arith.addf %128, %131 : vector<8x32xf32>
    %133 = arith.addf %132, %103 : vector<8x32xf32>
    %c0_49 = arith.constant 0 : index
    %c0_50 = arith.constant 0 : index
    %c0_51 = arith.constant 0 : index
    %134 = vector.load %arg15[%c0_49, %c0_50, %c0_51] : memref<1x1x32xf32, #tpu.memory_space<vmem>>, vector<1x1x32xf32>
    %135 = vector.shape_cast %134 : vector<1x1x32xf32> to vector<1x32xf32>
    %c0_52 = arith.constant 0 : index
    %c0_53 = arith.constant 0 : index
    %c0_54 = arith.constant 0 : index
    %136 = vector.load %arg16[%c0_52, %c0_53, %c0_54] : memref<1x1x32xf32, #tpu.memory_space<vmem>>, vector<1x1x32xf32>
    %137 = vector.shape_cast %136 : vector<1x1x32xf32> to vector<1x32xf32>
    %cst_55 = arith.constant dense<0.000000e+00> : vector<8xf32>
    %138 = vector.multi_reduction <add>, %133, %cst_55 [1] : vector<8x32xf32> to vector<8xf32>
    %139 = vector.shape_cast %138 : vector<8xf32> to vector<8x1xf32>
    %cst_56 = arith.constant 3.200000e+01 : f32
    %140 = vector.broadcast %cst_56 : f32 to vector<8x1xf32>
    %141 = arith.divf %139, %140 : vector<8x1xf32>
    %142 = vector.broadcast %141 : vector<8x1xf32> to vector<8x32xf32>
    %143 = arith.subf %133, %142 : vector<8x32xf32>
    %144 = arith.mulf %143, %143 : vector<8x32xf32>
    %cst_57 = arith.constant dense<0.000000e+00> : vector<8xf32>
    %145 = vector.multi_reduction <add>, %144, %cst_57 [1] : vector<8x32xf32> to vector<8xf32>
    %146 = vector.shape_cast %145 : vector<8xf32> to vector<8x1xf32>
    %cst_58 = arith.constant 3.200000e+01 : f32
    %147 = vector.broadcast %cst_58 : f32 to vector<8x1xf32>
    %148 = arith.divf %146, %147 : vector<8x1xf32>
    %149 = vector.broadcast %141 : vector<8x1xf32> to vector<8x32xf32>
    %150 = arith.subf %133, %149 : vector<8x32xf32>
    %cst_59 = arith.constant 9.99999996E-13 : f32
    %151 = vector.broadcast %cst_59 : f32 to vector<8x1xf32>
    %152 = arith.addf %148, %151 : vector<8x1xf32>
    %153 = math.rsqrt %152 : vector<8x1xf32>
    %154 = vector.broadcast %153 : vector<8x1xf32> to vector<8x32xf32>
    %155 = arith.mulf %150, %154 : vector<8x32xf32>
    %156 = vector.broadcast %135 : vector<1x32xf32> to vector<8x32xf32>
    %157 = arith.mulf %155, %156 : vector<8x32xf32>
    %158 = vector.broadcast %137 : vector<1x32xf32> to vector<8x32xf32>
    %159 = arith.addf %157, %158 : vector<8x32xf32>
    %c0_60 = arith.constant 0 : index
    %c0_61 = arith.constant 0 : index
    %160 = vector.load %arg22[%c0_60, %c0_61] : memref<8x32xf32, #tpu.memory_space<vmem>>, vector<8x32xf32>
    tpu.vector_store %arg22[%c0_60, %c0_61], %159 {strides = array<i32>} : memref<8x32xf32, #tpu.memory_space<vmem>>, vector<8x32xf32>,
    %c1_i32 = arith.constant 1 : i32
    %161 = arith.cmpi eq, %arg1, %c1_i32 : i32
    %162 = arith.extui %161 : i1 to i32
    %c0_i32_62 = arith.constant 0 : i32
    %163 = arith.cmpi ne, %162, %c0_i32_62 : i32
    scf.if %163 {
      %164 = vector.extract_strided_slice %159 {offsets = [0, 0], sizes = [1, 32], strides = [1, 1]} : vector<8x32xf32> to vector<1x32xf32>
      %c0_63 = arith.constant 0 : index
      %c0_64 = arith.constant 0 : index
      %165 = vector.load %arg17[%c0_63, %c0_64] : memref<32x32xbf16, #tpu.memory_space<vmem>>, vector<32x32xbf16>
      %166 = arith.truncf %164 : vector<1x32xf32> to vector<1x32xbf16>
      %cst_65 = arith.constant dense<0.000000e+00> : vector<1x32xf32>
      %167 = tpu.matmul %166, %165, %cst_65 {dimension_numbers = #tpu.dot_dimension_numbers<[1], [0], [0], [1], [0, 0, 1, 1], [], []>} : vector<1x32xbf16>, vector<32x32xbf16>, vector<1x32xf32> -> vector<1x32xf32>
      %c0_66 = arith.constant 0 : index
      %c0_67 = arith.constant 0 : index
      %168 = vector.load %arg18[%c0_66, %c0_67] : memref<1x32xf32, #tpu.memory_space<vmem>>, vector<1x32xf32>
      %169 = arith.addf %167, %168 : vector<1x32xf32>
      %170 = math.tanh %169 : vector<1x32xf32>
      %c0_68 = arith.constant 0 : index
      %c0_69 = arith.constant 0 : index
      %171 = vector.load %arg19[%c0_68, %c0_69] : memref<32x128xbf16, #tpu.memory_space<vmem>>, vector<32x128xbf16>
      %172 = arith.truncf %170 : vector<1x32xf32> to vector<1x32xbf16>
      %cst_70 = arith.constant dense<0.000000e+00> : vector<1x128xf32>
      %173 = tpu.matmul %172, %171, %cst_70 {dimension_numbers = #tpu.dot_dimension_numbers<[1], [0], [0], [1], [0, 0, 1, 1], [], []>} : vector<1x32xbf16>, vector<32x128xbf16>, vector<1x128xf32> -> vector<1x128xf32>
      %c0_71 = arith.constant 0 : index
      %c0_72 = arith.constant 0 : index
      %174 = vector.load %arg20[%c0_71, %c0_72] : memref<1x128xf32, #tpu.memory_space<vmem>>, vector<1x128xf32>
      %175 = arith.addf %173, %174 : vector<1x128xf32>
      %176 = vector.shape_cast %175 : vector<1x128xf32> to vector<1x128xf32>
      %177 = vector.broadcast %176 : vector<1x128xf32> to vector<8x128xf32>
      %c0_73 = arith.constant 0 : index
      %c0_74 = arith.constant 0 : index
      %c0_75 = arith.constant 0 : index
      %178 = vector.load %arg21[%c0_73, %c0_74, %c0_75] : memref<1x8x128xf32, #tpu.memory_space<vmem>>, vector<1x8x128xf32>
      %179 = vector.shape_cast %178 : vector<1x8x128xf32> to vector<8x128xf32>
      %180 = vector.shape_cast %177 : vector<8x128xf32> to vector<1x8x128xf32>
      tpu.vector_store %arg21[%c0_73, %c0_74, %c0_75], %180 {strides = array<i32>} : memref<1x8x128xf32, #tpu.memory_space<vmem>>, vector<1x8x128xf32>,
    } else {
    }
    return
  }
  func.func @transform_0(%arg0: i32, %arg1: i32) -> (i32, i32, i32) {
    %c0_i32 = arith.constant 0 : i32
    %c0_i32_0 = arith.constant 0 : i32
    %c0_i32_1 = arith.constant 0 : i32
    return %arg0, %c0_i32, %c0_i32_0 : i32, i32, i32
  }
  func.func @transform_1(%arg0: i32, %arg1: i32) -> (i32, i32) {
    %c0_i32 = arith.constant 0 : i32
    %c0_i32_0 = arith.constant 0 : i32
    %c0_i32_1 = arith.constant 0 : i32
    return %c0_i32, %c0_i32_0 : i32, i32
  }
  func.func @transform_2(%arg0: i32, %arg1: i32) -> (i32, i32) {
    %c0_i32 = arith.constant 0 : i32
    %c0_i32_0 = arith.constant 0 : i32
    %c0_i32_1 = arith.constant 0 : i32
    return %c0_i32, %c0_i32_0 : i32, i32
  }
  func.func @transform_3(%arg0: i32, %arg1: i32) -> (i32, i32, i32) {
    %c0_i32 = arith.constant 0 : i32
    %c0_i32_0 = arith.constant 0 : i32
    %c0_i32_1 = arith.constant 0 : i32
    return %arg1, %c0_i32, %c0_i32_0 : i32, i32, i32
  }
  func.func @transform_4(%arg0: i32, %arg1: i32) -> (i32, i32, i32) {
    %c0_i32 = arith.constant 0 : i32
    %c0_i32_0 = arith.constant 0 : i32
    %c0_i32_1 = arith.constant 0 : i32
    return %arg1, %c0_i32, %c0_i32_0 : i32, i32, i32
  }
  func.func @transform_5(%arg0: i32, %arg1: i32) -> (i32, i32, i32) {
    %c0_i32 = arith.constant 0 : i32
    %c0_i32_0 = arith.constant 0 : i32
    %c0_i32_1 = arith.constant 0 : i32
    return %arg1, %c0_i32, %c0_i32_0 : i32, i32, i32
  }
  func.func @transform_6(%arg0: i32, %arg1: i32) -> (i32, i32, i32) {
    %c0_i32 = arith.constant 0 : i32
    %c0_i32_0 = arith.constant 0 : i32
    %c0_i32_1 = arith.constant 0 : i32
    return %arg1, %c0_i32, %c0_i32_0 : i32, i32, i32
  }
  func.func @transform_7(%arg0: i32, %arg1: i32) -> (i32, i32, i32) {
    %c0_i32 = arith.constant 0 : i32
    %c0_i32_0 = arith.constant 0 : i32
    %c0_i32_1 = arith.constant 0 : i32
    return %arg1, %c0_i32, %c0_i32_0 : i32, i32, i32
  }
  func.func @transform_8(%arg0: i32, %arg1: i32) -> (i32, i32, i32) {
    %c0_i32 = arith.constant 0 : i32
    %c0_i32_0 = arith.constant 0 : i32
    %c0_i32_1 = arith.constant 0 : i32
    return %arg1, %c0_i32, %c0_i32_0 : i32, i32, i32
  }
  func.func @transform_9(%arg0: i32, %arg1: i32) -> (i32, i32, i32) {
    %c0_i32 = arith.constant 0 : i32
    %c0_i32_0 = arith.constant 0 : i32
    %c0_i32_1 = arith.constant 0 : i32
    return %arg1, %c0_i32, %c0_i32_0 : i32, i32, i32
  }
  func.func @transform_10(%arg0: i32, %arg1: i32) -> (i32, i32, i32) {
    %c0_i32 = arith.constant 0 : i32
    %c0_i32_0 = arith.constant 0 : i32
    %c0_i32_1 = arith.constant 0 : i32
    return %arg1, %c0_i32, %c0_i32_0 : i32, i32, i32
  }
  func.func @transform_11(%arg0: i32, %arg1: i32) -> (i32, i32, i32) {
    %c0_i32 = arith.constant 0 : i32
    %c0_i32_0 = arith.constant 0 : i32
    %c0_i32_1 = arith.constant 0 : i32
    return %arg1, %c0_i32, %c0_i32_0 : i32, i32, i32
  }
  func.func @transform_12(%arg0: i32, %arg1: i32) -> (i32, i32, i32) {
    %c0_i32 = arith.constant 0 : i32
    %c0_i32_0 = arith.constant 0 : i32
    %c0_i32_1 = arith.constant 0 : i32
    return %arg1, %c0_i32, %c0_i32_0 : i32, i32, i32
  }
  func.func @transform_13(%arg0: i32, %arg1: i32) -> (i32, i32, i32) {
    %c0_i32 = arith.constant 0 : i32
    %c0_i32_0 = arith.constant 0 : i32
    %c0_i32_1 = arith.constant 0 : i32
    return %arg1, %c0_i32, %c0_i32_0 : i32, i32, i32
  }
  func.func @transform_14(%arg0: i32, %arg1: i32) -> (i32, i32, i32) {
    %c0_i32 = arith.constant 0 : i32
    %c0_i32_0 = arith.constant 0 : i32
    %c0_i32_1 = arith.constant 0 : i32
    return %arg1, %c0_i32, %c0_i32_0 : i32, i32, i32
  }
  func.func @transform_15(%arg0: i32, %arg1: i32) -> (i32, i32) {
    %c0_i32 = arith.constant 0 : i32
    %c0_i32_0 = arith.constant 0 : i32
    %c0_i32_1 = arith.constant 0 : i32
    return %c0_i32, %c0_i32_0 : i32, i32
  }
  func.func @transform_16(%arg0: i32, %arg1: i32) -> (i32, i32) {
    %c0_i32 = arith.constant 0 : i32
    %c0_i32_0 = arith.constant 0 : i32
    %c0_i32_1 = arith.constant 0 : i32
    return %c0_i32, %c0_i32_0 : i32, i32
  }
  func.func @transform_17(%arg0: i32, %arg1: i32) -> (i32, i32) {
    %c0_i32 = arith.constant 0 : i32
    %c0_i32_0 = arith.constant 0 : i32
    %c0_i32_1 = arith.constant 0 : i32
    return %c0_i32, %c0_i32_0 : i32, i32
  }
  func.func @transform_18(%arg0: i32, %arg1: i32) -> (i32, i32) {
    %c0_i32 = arith.constant 0 : i32
    %c0_i32_0 = arith.constant 0 : i32
    %c0_i32_1 = arith.constant 0 : i32
    return %c0_i32, %c0_i32_0 : i32, i32
  }
  func.func @transform_19(%arg0: i32, %arg1: i32) -> (i32, i32, i32) {
    %c0_i32 = arith.constant 0 : i32
    %c0_i32_0 = arith.constant 0 : i32
    %c0_i32_1 = arith.constant 0 : i32
    return %arg0, %c0_i32, %c0_i32_0 : i32, i32, i32
  }
}

</mosaic_0001>

<bundles_post_ra>
// kernel: bert_forward.1
= control target key start
LH: loop header
LB: loop body
LE: loop exit
PB: predicated region body
PF: predicated region fallthrough
CT: control target
= control target key end

     0   :  { %s2430_s30 = smov 0   ;;  %s2432_s20 = smov 0   ;;  %s2722_s0 = inlined_call_operand.vmem [shape: f32[2,8,32], index: 0, kind: input, shape index: {}]   ;;  %s2723_s1 = inlined_call_operand.vmem [shape: f32[1,32], index: 1, kind: input, shape index: {}]   ;;  %s2724_s2 = inlined_call_operand.vmem [shape: f32[1,32], index: 2, kind: input, shape index: {}]   ;;  %s2725_s3 = inlined_call_operand.vmem [shape: bf16[2,32,96], index: 3, kind: input, shape index: {}]   ;;  %s2726_s4 = inlined_call_operand.vmem [shape: f32[2,1,96], index: 4, kind: input, shape index: {}]   ;;  %s2727_s5 = inlined_call_operand.vmem [shape: bf16[2,32,32], index: 5, kind: input, shape index: {}]   ;;  %s2728_s6 = inlined_call_operand.vmem [shape: f32[2,1,32], index: 6, kind: input, shape index: {}]   ;;  %s2729_s7 = inlined_call_operand.vmem [shape: f32[2,1,32], index: 7, kind: input, shape index: {}]   ;;  %s2730_s8 = inlined_call_operand.vmem [shape: f32[2,1,32], index: 8, kind: input, shape index: {}]   ;;  %s2731_s9 = inlined_call_operand.vmem [shape: bf16[2,32,64], index: 9, kind: input, shape index: {}]   ;;  %s2732_s10 = inlined_call_operand.vmem [shape: f32[2,1,64], index: 10, kind: input, shape index: {}]   ;;  %s2733_s11 = inlined_call_operand.vmem [shape: bf16[2,64,32], index: 11, kind: input, shape index: {}]   ;;  %s2734_s12 = inlined_call_operand.vmem [shape: f32[2,1,32], index: 12, kind: input, shape index: {}]   ;;  %s2735_s13 = inlined_call_operand.vmem [shape: f32[2,1,32], index: 13, kind: input, shape index: {}]   ;;  %s2736_s14 = inlined_call_operand.vmem [shape: f32[2,1,32], index: 14, kind: input, shape index: {}]   ;;  %s2737_s15 = inlined_call_operand.vmem [shape: bf16[32,32], index: 15, kind: input, shape index: {}]   ;;  %s2738_s16 = inlined_call_operand.vmem [shape: f32[1,32], index: 16, kind: input, shape index: {}]   ;;  %s2739_s17 = inlined_call_operand.vmem [shape: bf16[32,128], index: 17, kind: input, shape index: {}]   ;;  %s2740_s18 = inlined_call_operand.vmem [shape: f32[1,128], index: 18, kind: input, shape index: {}]   ;;  %s2741_s19 = inlined_call_operand.vmem [shape: f32[2,8,128], index: 19, kind: output, shape index: {}]  }
   0x1   :  { %2749 = sst [smem:[#allocation10_spill]] %s2722_s0  ;;  %s2428_s0 = smov 0  }
   0x2   :  { %2750 = sst [smem:[#allocation11_spill]] %s2723_s1  ;;  %s2434_s21 = smov 0  }
   0x3   :  { %2751 = sst [smem:[#allocation12_spill]] %s2724_s2  ;;  %s2436_s1 = smov 0  }
   0x4   :  { %2752 = sst [smem:[#allocation13_spill]] %s2725_s3 }
   0x5   :  { %2753 = sst [smem:[#allocation14_spill]] %s2727_s5 }
   0x6   :  { %2754 = sst [smem:[#allocation15_spill]] %s2731_s9 }
   0x7   :  { %2755 = sst [smem:[#allocation16_spill]] %s2737_s15 }
   0x8   :  { %2756 = sst [smem:[#allocation17_spill]] %s2738_s16 }
   0x9   :  { %2757 = sst [smem:[#allocation18_spill]] %s2739_s17 }
   0xa   :  { %2758 = sst [smem:[#allocation19_spill]] %s2740_s18 }
   0xb   :  { %2759 = sst [smem:[#allocation20_spill]] %s2741_s19 }
   0xc LB: > { %2760 = sst [smem:[#allocation3_spill]] %s2298_s0  ;;  %s38_s22 = sadd.s32 1, %s2306_s20  ;;  %s2314_s1 = sphi %s2436_s1, %s29_s1   ;;  %s2310_s21 = sphi %s2434_s21, %s2790_s21   ;;  %s2306_s20 = sphi %s2432_s20, %s2789_s20   ;;  %s2302_s30 = sphi %s2430_s30, %s2788_s30   ;;  %s2298_s0 = sphi %s2428_s0, %s2787_s0  }
   0xd   : > { %2761 = sst [smem:[#allocation4_spill]] %s2306_s20  ;;  %s41_s2 = sadd.s32 1, %s2310_s21 }
   0xe   : > { %2762 = sst [smem:[#allocation5_spill]] %s2310_s21  ;;  %p39_p0 = scmp.ge.s32.totalorder %s38_s22, 2 }
   0xf   : > { %2763 = sst [smem:[#allocation6_spill]] %s2314_s1  ;;  %p1991_p1 = scmp.ge.s32.totalorder %s2314_s1, 1 }
  0x10   : > { %p652_p2 = scmp.lt.s32.totalorder %s2314_s1, 5  ;;  %s2792_s22 = smov (%p39_p0, %s38_s22), 0 }
  0x11   : > { %2764 = sst [smem:[#allocation7_spill]] %s2792_s22  ;;  %s2794_s2 = smov (!%p39_p0, %s41_s2), %s2310_s21 }
  0x12   : > { %p653_p3 = pnand %p1991_p1, %p652_p2  ;;  %p43_p4 = scmp.ge.s32.totalorder %s2794_s2, 2 }
  0x14   : > { %s2796_s2 = smov (%p43_p4, %s2794_s2), 0  ;;  %656 = sbr.rel (%p653_p3) target bundleno = 3443 (0xd73), region = 96 }
  0x15   : > { %2765 = sst [smem:[#allocation8_spill]] %s2796_s2 }
  0x1b   : > { %p750_p5 = scmp.lt.s32.totalorder %s2302_s30, 1  ;;  %p754_p6 = scmp.lt.s32.totalorder %s2298_s0, 1 }
  0x1c   : > { %s2766_s26 = sld [smem:[#allocation10_spill]]  ;;  %s2767_s22 = sld [smem:[#allocation13_spill]] }
  0x1d   : > { %s2798_s30 = smov (!%p750_p5, %s2302_s30), 1  ;;  %s2769_s5 = sld [smem:[#allocation14_spill]] }
  0x1e   : > { %s2462_s23 = scalar_select %p754_p6, %s2298_s0, 1 }
  0x1f   : > { %s1992_s24 = sshll.u32 %s2798_s30, 3  ;;  %s2770_s9 = sld [smem:[#allocation15_spill]] }
  0x20   : > { %s2044_s28 = sshll.u32 %s2462_s23, 4  ;;  %s791_s25 = scalar_lea.vmem %s2734_s12, %s2462_s23 }
  0x21   : > { %s797_s29 = scalar_lea.vmem %s2736_s14, %s2462_s23  ;;  %s2771_s18 = sld [smem:[#allocation20_spill]] }
  0x22   : > { %s753_s27 = scalar_lea.vmem %s2766_s26, %s1992_s24  ;;  %s2471_s21 = scalar_lea.vmem %s2767_s22, %s2044_s28 }
  0x23   : > { %2768 = sst [smem:[#allocation9_spill]] %s2471_s21  ;;  %s2480_s15 = scalar_lea.vmem %s2769_s5, %s2044_s28 }
  0x24   : > { %s2047_s5 = sshll.u32 %s2462_s23, 5  ;;  %s794_s21 = scalar_lea.vmem %s2735_s13, %s2462_s23 }
  0x25   : > { %s2497_s1 = scalar_lea.vmem %s2770_s9, %s2044_s28  ;;  %s2511_s19 = scalar_lea.vmem %s2733_s11, %s2047_s5 }
  0x26   : > { %s2772_s0 = sld [smem:[#allocation3_spill]] }
  0x27   : > { %s2524_s9 = scalar_lea.vmem %s2771_s18, %s1992_s24 }
  0x2c   : > { %p2002_p7 = scmp.ne.s32.totalorder %s2772_s0, 0 }
  0x2d   : > { %v807_v0 = vld [vmem:[%s753_s27] sm:$0xff] (!%p2002_p7)  ;;  %vm810_vm0 = vcmask (!%p2002_p7), 261120   ;;  %s2773_s24 = sld [smem:[#allocation11_spill]] (!%p2002_p7)  ;;  %s2774_s3 = sld [smem:[#allocation12_spill]] (!%p2002_p7) }
  0x2e   : > { %806 = sbr.rel (%p2002_p7) target bundleno = 360 (0x168), region = 100  ;;  %v811_v1 = vsel (!%p2002_p7), %vm810_vm0, %v807_v0, 0.0 }
  0x2f   : > { %812 = vadd.xlane.f32.xlu0 (!%p2002_p7), %v811_v1 }
  0x33   : > { %v2003_v11 = vld [vmem:[%s2773_s24] ss:$0 sm:$0xff] (!%p2002_p7) }
  0x34   : > { %v2004_v13 = vld [vmem:[%s2774_s3] ss:$0 sm:$0xff] (!%p2002_p7) }
  0xbc   : > { %v813_v2 = vpop.xlane.xlu0 %812 }
  0xbd   : > { %v815_v3 = vmul.f32 0.03125, %v813_v2 }
  0xbf   : > { %v816_v4 = vsub.f32 %v807_v0, %v815_v3 }
  0xc1   : > { %v817_v5 = vmul.f32 %v816_v4, %v816_v4 }
  0xc3   : > { %v818_v6 = vsel %vm810_vm0, %v817_v5, 0.0 }
  0xc4   : > { %819 = vadd.xlane.f32.xlu0 %v818_v6 }
 0x151   : > { %v820_v7 = vpop.xlane.xlu0 %819 }
 0x152   : > { %v821_v8 = vmul.f32 0.03125, %v820_v7 }
 0x154   : > { %v822_v9 = vadd.f32 1e-12, %v821_v8 }
 0x156   : > { %2236 = vrsqrt.f32 %v822_v9 }
 0x160   : > { %v2237_v10 = vpop.eup %2236 }
 0x161   : > { %v824_v12 = vmul.f32 %v2237_v10, %v816_v4 }
 0x163   : > { %v831_v14 = vmul.f32 %v2003_v11, %v824_v12 }
 0x165   : > { %v838_v15 = vadd.f32 %v2004_v13, %v831_v14 }
 0x167   : > { %839 = vst.msk [vmem:[#allocation2] sm:$0xff] %vm810_vm0, %v838_v15 }
 0x168 PF: > { %s2775_s26 = sld [smem:[#allocation9_spill]]  ;;  %v2316_v17 = vmov 0.0   ;;  %vm2317_vm1 = vmmov 0   ;;  %vm865_vm2 = vcmask 261120   ;;  %s2776_s28 = scalar_lea.vmem %s2726_s4, %s2462_s23  ;;  %vm926_vm3 = vcmask 64512  }
 0x169   : > { %2084 = vmatprep.subr.bf16.mxu0 %v2316_v17  ;;  %2092 = vmatprep.subr.bf16.mxu1 %v2316_v17  ;;  %v2005_v21 = vld [vmem:[%s2776_s28] ss:$0 sm:$0xff]  ;;  %s2318_s20 = smov 104   ;;  %s2319_s16 = smov 120   ;;  %vm1177_vm4 = vcmask 1043456   ;;  %vm1378_vm5 = vcmask 130048  }
 0x16a   : > { %2088 = vmatprep.mubr.msk.bf16.mxu0 %vm2317_vm1, %v2316_v17  ;;  %2094 = vmatprep.mubr.msk.bf16.mxu1 %vm2317_vm1, %v2316_v17  ;;  %s2320_s17 = smov 112   ;;  %s2321_s0 = smov 96   ;;  %vm1380_vm6 = vcmask 195584   ;;  %vm1596_vm7 = vcmask 523264  }
 0x16b   : > { %s2322_s5 = smov 64   ;;  %s2323_s18 = smov 8  }
 0x16c   : > { %s2324_s24 = smov 16   ;;  %s2325_s27 = smov 24  }
 0x16d   : > { %s2777_s3 = scalar_lea.vmem %s2728_s6, %s2462_s23  ;;  %s2778_s22 = scalar_lea.vmem %s2729_s7, %s2462_s23 }
 0x16e   : > { %v2238_v16 = vld [vmem:[%s2775_s26] sm:$0xff]   ;;  %v2239_v18 = vld [vmem:[%s2775_s26 + $0x8] sm:$0xff]  }
 0x16f   : > { %2085 = vmatpush3.bf16.msra.mxu0 %v2238_v16  ;;  %v2542_v19 = vld [vmem:[#allocation2] sm:$0xff] }
 0x170   : > { %2086 = vmatprep.subr.bf16.mxu0 %v2316_v17  ;;  %v845_v20 = vpack.c.bf16 %v2542_v19, %v2542_v19 }
 0x173   : > { %2087 = vmatpush3.bf16.msra.mxu0 %v2239_v18 }
 0x174   : > { %2098 = vmatprep.subr.bf16.mxu0 %v2316_v17 }
 0x176   : > { %2089 = vmatmul.mubr.msk.bf16.vlgmr.msra.gmra.mrb[0].mxu0 %vm865_vm2, %v845_v20 }
 0x177   : > { %2100 = vmatprep.mubr.msk.bf16.mxu0 %vm2317_vm1, %v2316_v17 }
 0x249   : > { %v903_v22 = vpop.f32.mrb[0].mxu0 }
 0x24a   : > { %v904_v23 = vadd.f32 %v2005_v21, %v903_v22  ;;  %v2090_v24 = vpop.f32.mrb[1].mxu0 }
 0x24b   : > { %v906_v25 = vpop.f32.mrb[2].mxu0 }
 0x24c   : > { %916 = vrot.lane.b32.xlu1 %v904_v23, %s2318_s20  ;;  %910 = vrot.lane.b32.xlu0 %v904_v23, %s2319_s16  ;;  %v2091_v26 = vpop.f32.mrb[3].mxu0  ;;  %v2558_v27 = vpack.c.bf16 %v904_v23, %v904_v23 }
 0x250   : > { %913 = vrot.lane.b32.xlu0 %v904_v23, %s2320_s17  ;;  %924 = vrot.lane.b32.xlu1 %v2558_v27, %s2321_s0 }
 0x2be   : > { %v917_v28 = vpop.permute.xlu1 %916  ;;  %v911_v29 = vpop.permute.xlu0 %910 }
 0x2bf   : > { %v920_v30 = vpack.c.bf16 %v911_v29, %v911_v29  ;;  %v2561_v33 = vpack.c.bf16 %v917_v28, %v917_v28 }
 0x2c1   : > { %974 = vrot.lane.b32.xlu0 %v920_v30, %s2321_s0 }
 0x2c2   : > { %v914_v31 = vpop.permute.xlu0 %913  ;;  %v925_v32 = vpop.permute.xlu1 %924 }
 0x2c3   : > { %v2563_v34 = vpack.c.bf16 %v914_v31, %v914_v31  ;;  %v931_v35 = vsel %vm926_vm3, %v925_v32, 0 }
 0x2c4   : > { %2093 = vmatpush3.bf16.xpose.msra.mxu1 %v931_v35 }
 0x2c5   : > { %1072 = vrot.lane.b32.xlu0 %v2561_v33, %s2321_s0  ;;  %1023 = vrot.lane.b32.xlu1 %v2563_v34, %s2321_s0  ;;  %s2780_s0 = scalar_lea.vmem %s2732_s10, %s2462_s23 }
 0x2c6   : > { %2104 = vmatprep.subr.bf16.mxu1 %v2316_v17 }
 0x2cb   : > { %2095 = vmatmul.mubr.msk.bf16.vlgmr.msra.gmra.mrb[0].mxu1 %vm926_vm3, %v2558_v27 }
 0x2cc   : > { %2106 = vmatprep.mubr.msk.bf16.mxu1 %vm2317_vm1, %v2316_v17 }
 0x333   : > { %v975_v36 = vpop.permute.xlu0 %974 }
 0x334   : > { %v980_v37 = vsel %vm926_vm3, %v975_v36, 0 }
 0x335   : > { %2099 = vmatpush3.bf16.xpose.msra.mxu0 %v980_v37 }
 0x336   : > { %2110 = vmatprep.subr.bf16.mxu0 %v2316_v17 }
 0x337   : > { %v1024_v38 = vpop.permute.xlu1 %1023  ;;  %v1073_v40 = vpop.permute.xlu0 %1072 }
 0x338   : > { %v1029_v39 = vsel %vm926_vm3, %v1024_v38, 0  ;;  %v1078_v41 = vsel %vm926_vm3, %v1073_v40, 0 }
 0x339   : > { %2105 = vmatpush3.bf16.xpose.msra.mxu1 %v1029_v39 }
 0x33a   : > { %2116 = vmatprep.subr.bf16.mxu1 %v2316_v17 }
 0x33c   : > { %2101 = vmatmul.mubr.msk.bf16.vlgmr.msra.gmra.mrb[4].mxu0 %vm926_vm3, %v920_v30 }
 0x33d   : > { %2111 = vmatpush3.bf16.xpose.msra.mxu0 %v1078_v41  ;;  %2112 = vmatprep.mubr.msk.bf16.mxu0 %vm2317_vm1, %v2316_v17 }
 0x33e   : > { %2122 = vmatprep.subr.bf16.mxu0 %v2316_v17 }
 0x340   : > { %2107 = vmatmul.mubr.msk.bf16.vlgmr.msra.gmra.mrb[4].mxu1 %vm926_vm3, %v2563_v34 }
 0x341   : > { %2118 = vmatprep.mubr.msk.bf16.mxu1 %vm2317_vm1, %v2316_v17 }
 0x344   : > { %2113 = vmatmul.mubr.msk.bf16.vlgmr.msra.gmra.mrb[8].mxu0 %vm926_vm3, %v2561_v33 }
 0x345   : > { %2124 = vmatprep.mubr.msk.bf16.mxu0 %vm2317_vm1, %v2316_v17 }
 0x39e   : > { %v967_v42 = vpop.f32.mrb[0].mxu1 }
 0x39f   : > { %v1120_v43 = vmul.f32 0.35355338, %v967_v42  ;;  %v2096_v44 = vpop.f32.mrb[1].mxu1 }
 0x3a0   : > { %v970_v45 = vpop.f32.mrb[2].mxu1 }
 0x3a1   : > { %v2097_v46 = vpop.f32.mrb[3].mxu1  ;;  %v1124_v47 = vsel %vm926_vm3, %v1120_v43, -inf }
 0x3a2   : > { %1125 = vmax.xlane.f32.xlu1 %v1124_v47 }
 0x40f   : > { %v1016_v48 = vpop.f32.mrb[4].mxu0 }
 0x410   : > { %v1121_v49 = vmul.f32 0.35355338, %v1016_v48  ;;  %v2102_v50 = vpop.f32.mrb[5].mxu0 }
 0x411   : > { %v1019_v51 = vpop.f32.mrb[6].mxu0 }
 0x412   : > { %v2103_v52 = vpop.f32.mrb[7].mxu0  ;;  %v1127_v53 = vsel %vm926_vm3, %v1121_v49, -inf }
 0x413   : > { %v1065_v54 = vpop.f32.mrb[4].mxu1  ;;  %1128 = vmax.xlane.f32.xlu0 %v1127_v53  ;;  %v2240_v52 = vld [vmem:[%s2480_s15] sm:$0xff]   ;;  %v2241_v53 = vld [vmem:[%s2480_s15 + $0x8] sm:$0xff]   ;;  %s2781_s15 = sld [smem:[#allocation3_spill]] }
 0x414   : > { %v1122_v55 = vmul.f32 0.35355338, %v1065_v54  ;;  %v2108_v56 = vpop.f32.mrb[5].mxu1 }
 0x415   : > { %v1068_v57 = vpop.f32.mrb[6].mxu1 }
 0x416   : > { %v2109_v58 = vpop.f32.mrb[7].mxu1  ;;  %v1130_v59 = vsel %vm926_vm3, %v1122_v55, -inf }
 0x417   : > { %1131 = vmax.xlane.f32.xlu0 %v1130_v59  ;;  %v1114_v60 = vpop.f32.mrb[8].mxu0 }
 0x418   : > { %v1123_v61 = vmul.f32 0.35355338, %v1114_v60  ;;  %v2114_v62 = vpop.f32.mrb[9].mxu0 }
 0x419   : > { %v1117_v63 = vpop.f32.mrb[10].mxu0  ;;  %p2035_p8 = scmp.ne.s32.totalorder %s2781_s15, 1 }
 0x41a   : > { %v2115_v0 = vpop.f32.mrb[11].mxu0  ;;  %v1133_v1 = vsel %vm926_vm3, %v1123_v61, -inf  ;;  %s2782_s26 = sld [smem:[#allocation16_spill]] (!%p2035_p8)  ;;  %vm2327_vm8 = vmmov (!%p2035_p8), 0   ;;  %s2784_s17 = sld [smem:[#allocation17_spill]] (!%p2035_p8) }
 0x41b   : > { %1134 = vmax.xlane.f32.xlu1 %v1133_v1 }
 0x42c   : > { %1221 = vrot.lane.b32.xlu1 %v920_v30, %s2322_s5 }
 0x42d   : > { %1172 = vrot.lane.b32.xlu0 %v2558_v27, %s2322_s5 }
 0x42f   : > { %v1126_v2 = vpop.xlane.xlu1 %1125 }
 0x430   : > { %v1136_v3 = vsub.f32 %v1120_v43, %v1126_v2 }
 0x432   : > { %v1140_v4 = vmul.f32 1.442695, %v1136_v3 }
 0x434   : > { %2248 = vpow2.f32 %v1140_v4 }
 0x43e   : > { %v2249_v5 = vpop.eup %2248 }
 0x43f   : > { %v1148_v6 = vsel %vm926_vm3, %v2249_v5, 0.0 }
 0x44c   : > { %1149 = vadd.xlane.f32.xlu0 %v1148_v6 }
 0x4a0   : > { %v1129_v7 = vpop.xlane.xlu0 %1128 }
 0x4a1   : > { %v1137_v8 = vsub.f32 %v1121_v49, %v1129_v7 }
 0x4a3   : > { %v1142_v9 = vmul.f32 1.442695, %v1137_v8 }
 0x4a4   : > { %v1132_v10 = vpop.xlane.xlu0 %1131 }
 0x4a5   : > { %2250 = vpow2.f32 %v1142_v9  ;;  %v1138_v11 = vsub.f32 %v1122_v55, %v1132_v10  ;;  %v2017_v9 = vld [vmem:[%s2777_s3] ss:$0 sm:$0xff] }
 0x4a7   : > { %v1144_v12 = vmul.f32 1.442695, %v1138_v11 }
 0x4a8   : > { %v1173_v13 = vpop.permute.xlu0 %1172  ;;  %v1135_v14 = vpop.xlane.xlu1 %1134 }
 0x4a9   : > { %2252 = vpow2.f32 %v1144_v12  ;;  %v1179_v15 = vsel %vm1177_vm4, %v1173_v13, 0  ;;  %v1139_v16 = vsub.f32 %v1123_v61, %v1135_v14 }
 0x4aa   : > { %2117 = vmatpush3.bf16.msra.mxu1 %v1179_v15 }
 0x4ab   : > { %v1146_v18 = vmul.f32 1.442695, %v1139_v16  ;;  %2128 = vmatprep.subr.bf16.mxu1 %v2316_v17 }
 0x4ac   : > { %v1222_v20 = vpop.permute.xlu1 %1221 }
 0x4ad   : > { %2254 = vpow2.f32 %v1146_v18  ;;  %v1227_v21 = vsel %vm1177_vm4, %v1222_v20, 0 }
 0x4ae   : > { %2123 = vmatpush3.bf16.msra.mxu0 %v1227_v21 }
 0x4af   : > { %v2251_v22 = vpop.eup %2250  ;;  %2134 = vmatprep.subr.bf16.mxu0 %v2316_v17 }
 0x4b0   : > { %v1151_v23 = vsel %vm926_vm3, %v2251_v22, 0.0 }
 0x4b1   : > { %1152 = vadd.xlane.f32.xlu1 %v1151_v23 }
 0x4b3   : > { %v2253_v24 = vpop.eup %2252 }
 0x4b4   : > { %v1154_v25 = vsel %vm926_vm3, %v2253_v24, 0.0 }
 0x4b5   : > { %1155 = vadd.xlane.f32.xlu0 %v1154_v25  ;;  %v2243_v25 = vld [vmem:[%s2497_s1 + $0x8] sm:$0xff]  }
 0x4b7   : > { %v2255_v26 = vpop.eup %2254 }
 0x4b8   : > { %v1157_v27 = vsel %vm926_vm3, %v2255_v26, 0.0 }
 0x4b9   : > { %1158 = vadd.xlane.f32.xlu1 %v1157_v27 }
 0x4ca   : > { %1269 = vrot.lane.b32.xlu1 %v2563_v34, %s2322_s5 }
 0x4cb   : > { %1317 = vrot.lane.b32.xlu0 %v2561_v33, %s2322_s5  ;;  %s2785_s5 = sld [smem:[#allocation19_spill]] (!%p2035_p8) }
 0x4d9   : > { %v1150_v28 = vpop.xlane.xlu0 %1149 }
 0x4da   : > { %2256 = vrcp.f32 %v1150_v28 }
 0x4e4   : > { %v2257_v29 = vpop.eup %2256 }
 0x4e5   : > { %v1164_v30 = vmul.f32 %v2257_v29, %v2249_v5  ;;  %v2021_v29 = vld [vmem:[%s2778_s22] ss:$0 sm:$0xff]  ;;  %s2783_s22 = sld [smem:[#allocation18_spill]] (!%p2035_p8) }
 0x4e7   : > { %v1168_v31 = vpack.c.bf16 %v1164_v30, %v1164_v30 }
 0x4e9   : > { %2119 = vmatmul.mubr.msk.bf16.vlgmr.msra.gmra.mrb[8].mxu1 %vm926_vm3, %v1168_v31 }
 0x4ea   : > { %2130 = vmatprep.mubr.msk.bf16.mxu1 %vm2317_vm1, %v2316_v17 }
 0x53e   : > { %v1153_v32 = vpop.xlane.xlu1 %1152 }
 0x53f   : > { %2258 = vrcp.f32 %v1153_v32 }
 0x542   : > { %v1156_v35 = vpop.xlane.xlu0 %1155 }
 0x543   : > { %2260 = vrcp.f32 %v1156_v35 }
 0x546   : > { %v1159_v36 = vpop.xlane.xlu1 %1158  ;;  %v1318_v33 = vpop.permute.xlu0 %1317 }
 0x547   : > { %2262 = vrcp.f32 %v1159_v36  ;;  %v1323_v43 = vsel %vm1177_vm4, %v1318_v33, 0  ;;  %v2247_v33 = vld [vmem:[%s2511_s19 + $0x18] sm:$0xff]  }
 0x549   : > { %v2259_v34 = vpop.eup %2258 }
 0x54a   : > { %v1165_v37 = vmul.f32 %v2259_v34, %v2251_v22  ;;  %v1270_v38 = vpop.permute.xlu1 %1269  ;;  %v2244_v34 = vld [vmem:[%s2511_s19] sm:$0xff]  }
 0x54b   : > { %v1275_v39 = vsel %vm1177_vm4, %v1270_v38, 0  ;;  %v2246_v38 = vld [vmem:[%s2511_s19 + $0x10] sm:$0xff]  }
 0x54c   : > { %2129 = vmatpush3.bf16.msra.mxu1 %v1275_v39  ;;  %v1169_v40 = vpack.c.bf16 %v1165_v37, %v1165_v37  ;;  %v2245_v37 = vld [vmem:[%s2511_s19 + $0x8] sm:$0xff]   ;;  %v2023_v39 = vld [vmem:[%s2780_s0] ss:$0 sm:$0xff] }
 0x54d   : > { %v2261_v41 = vpop.eup %2260  ;;  %2140 = vmatprep.subr.bf16.mxu1 %v2316_v17 }
 0x54e   : > { %v1166_v42 = vmul.f32 %v2261_v41, %v2253_v24  ;;  %2125 = vmatmul.mubr.msk.bf16.vlgmr.msra.gmra.mrb[12].mxu0 %vm926_vm3, %v1169_v40  ;;  %v2242_v24 = vld [vmem:[%s2497_s1] sm:$0xff]   ;;  %s2779_s1 = scalar_lea.vmem %s2730_s8, %s2462_s23 }
 0x54f   : > { %2135 = vmatpush3.bf16.msra.mxu0 %v1323_v43  ;;  %2136 = vmatprep.mubr.msk.bf16.mxu0 %vm2317_vm1, %v2316_v17  ;;  %v2022_v31 = vld [vmem:[%s2779_s1] ss:$0 sm:$0xff] }
 0x550   : > { %v1170_v44 = vpack.c.bf16 %v1166_v42, %v1166_v42  ;;  %2148 = vmatprep.subr.bf16.mxu0 %v2316_v17 }
 0x551   : > { %v2263_v45 = vpop.eup %2262 }
 0x552   : > { %v1167_v46 = vmul.f32 %v2263_v45, %v2255_v26  ;;  %2131 = vmatmul.mubr.msk.bf16.vlgmr.msra.gmra.mrb[12].mxu1 %vm926_vm3, %v1170_v44 }
 0x553   : > { %2144 = vmatprep.mubr.msk.bf16.mxu1 %vm2317_vm1, %v2316_v17  ;;  %2141 = vmatpush3.bf16.msra.mxu1 %v2240_v52 }
 0x554   : > { %v1171_v47 = vpack.c.bf16 %v1167_v46, %v1167_v46  ;;  %2142 = vmatprep.subr.bf16.mxu1 %v2316_v17 }
 0x556   : > { %2137 = vmatmul.mubr.msk.bf16.vlgmr.msra.gmra.mrb[16].mxu0 %vm926_vm3, %v1171_v47 }
 0x557   : > { %2152 = vmatprep.mubr.msk.bf16.mxu0 %vm2317_vm1, %v2316_v17  ;;  %2143 = vmatpush3.bf16.msra.mxu1 %v2241_v53 }
 0x558   : > { %2156 = vmatprep.subr.bf16.mxu1 %v2316_v17  ;;  %2149 = vmatpush3.bf16.msra.mxu0 %v2242_v24 }
 0x559   : > { %2150 = vmatprep.subr.bf16.mxu0 %v2316_v17 }
 0x55c   : > { %2151 = vmatpush3.bf16.msra.mxu0 %v2243_v25 }
 0x5bc   : > { %v1215_v48 = vpop.f32.mrb[8].mxu1 }
 0x5bd   : > { %v2120_v49 = vpop.f32.mrb[9].mxu1 }
 0x5be   : > { %v1218_v50 = vpop.f32.mrb[10].mxu1 }
 0x5bf   : > { %v2121_v51 = vpop.f32.mrb[11].mxu1 }
 0x621   : > { %v1263_v54 = vpop.f32.mrb[12].mxu0 }
 0x622   : > { %1366 = vrot.lane.b32.xlu1 %v1263_v54, %s2323_s18  ;;  %v2126_v55 = vpop.f32.mrb[13].mxu0  ;;  %v2027_v54 = vld [vmem:[%s791_s25] ss:$0 sm:$0xff] }
 0x623   : > { %v1266_v56 = vpop.f32.mrb[14].mxu0 }
 0x624   : > { %v2127_v57 = vpop.f32.mrb[15].mxu0 }
 0x625   : > { %v1311_v58 = vpop.f32.mrb[12].mxu1 }
 0x626   : > { %1370 = vrot.lane.b32.xlu0 %v1311_v58, %s2324_s24  ;;  %v2132_v59 = vpop.f32.mrb[13].mxu1 }
 0x627   : > { %v1314_v60 = vpop.f32.mrb[14].mxu1 }
 0x628   : > { %v2133_v61 = vpop.f32.mrb[15].mxu1 }
 0x629   : > { %v1359_v62 = vpop.f32.mrb[16].mxu0 }
 0x62a   : > { %1374 = vrot.lane.b32.xlu1 %v1359_v62, %s2325_s27  ;;  %v2138_v63 = vpop.f32.mrb[17].mxu0 }
 0x62b   : > { %v1362_v0 = vpop.f32.mrb[18].mxu0 }
 0x62c   : > { %v2139_v1 = vpop.f32.mrb[19].mxu0 }
 0x694   : > { %v1367_v2 = vpop.permute.xlu1 %1366 }
 0x695   : > { %v1377_v4 = vsel %vm926_vm3, %v1215_v48, %v1367_v2 }
 0x698   : > { %v1371_v3 = vpop.permute.xlu0 %1370 }
 0x699   : > { %v1379_v5 = vsel %vm1378_vm5, %v1377_v4, %v1371_v3 }
 0x69c   : > { %v1375_v6 = vpop.permute.xlu1 %1374 }
 0x69d   : > { %v1381_v7 = vsel %vm1380_vm6, %v1379_v5, %v1375_v6 }
 0x69e   : > { %v1386_v8 = vpack.c.bf16 %v1381_v7, %v1381_v7  ;;  %v2033_v7 = vld [vmem:[%s794_s21] ss:$0 sm:$0xff] }
 0x6a0   : > { %2145 = vmatmul.mubr.msk.bf16.vlgmr.msra.gmra.mrb[16].mxu1 %vm865_vm2, %v1386_v8 }
 0x6a1   : > { %2164 = vmatprep.mubr.msk.bf16.mxu1 %vm2317_vm1, %v2316_v17  ;;  %2157 = vmatpush3.bf16.msra.mxu1 %v2244_v34 }
 0x6a2   : > { %2158 = vmatprep.subr.bf16.mxu1 %v2316_v17 }
 0x6a5   : > { %2159 = vmatpush3.bf16.msra.mxu1 %v2245_v37 }
 0x6a6   : > { %2160 = vmatprep.subr.bf16.mxu1 %v2316_v17 }
 0x6a9   : > { %2161 = vmatpush3.bf16.msra.mxu1 %v2246_v38 }
 0x6aa   : > { %2162 = vmatprep.subr.bf16.mxu1 %v2316_v17 }
 0x6ad   : > { %2163 = vmatpush3.bf16.msra.mxu1 %v2247_v33 }
 0x773   : > { %v1443_v10 = vpop.f32.mrb[16].mxu1 }
 0x774   : > { %v1444_v11 = vadd.f32 %v2017_v9, %v1443_v10  ;;  %v2146_v12 = vpop.f32.mrb[17].mxu1  ;;  %v2034_v9 = vld [vmem:[%s797_s29] ss:$0 sm:$0xff] }
 0x775   : > { %v1446_v13 = vpop.f32.mrb[18].mxu1  ;;  %v2270_v12 = vld [vmem:[%s2782_s26] sm:$0xff] (!%p2035_p8)  }
 0x776   : > { %v2147_v14 = vpop.f32.mrb[19].mxu1  ;;  %v1449_v15 = vadd.f32 %v1444_v11, %v2542_v19  ;;  %v2326_v13 = vmov (!%p2035_p8), 0.0  }
 0x777   : > { %2168 = vmatprep.subr.bf16.mxu0 (!%p2035_p8), %v2326_v13  ;;  %2176 = vmatprep.subr.bf16.mxu1 (!%p2035_p8), %v2326_v13  ;;  %v2271_v14 = vld [vmem:[%s2782_s26 + $0x8] sm:$0xff] (!%p2035_p8)  }
 0x778   : > { %v1452_v16 = vsel %vm865_vm2, %v1449_v15, 0.0 }
 0x779   : > { %1453 = vadd.xlane.f32.xlu0 %v1452_v16  ;;  %v2272_v16 = vld [vmem:[%s2783_s22] sm:$0xff] (!%p2035_p8)  }
 0x806   : > { %v1454_v18 = vpop.xlane.xlu0 %1453 }
 0x807   : > { %v1456_v20 = vmul.f32 0.03125, %v1454_v18  ;;  %v2273_v18 = vld [vmem:[%s2783_s22 + $0x8] sm:$0xff] (!%p2035_p8)  }
 0x809   : > { %v1457_v21 = vsub.f32 %v1449_v15, %v1456_v20  ;;  %v1680_v20 = vld [vmem:[%s2784_s17] sm:$0x1] (!%p2035_p8) }
 0x80b   : > { %v1458_v22 = vmul.f32 %v1457_v21, %v1457_v21 }
 0x80d   : > { %v1459_v23 = vsel %vm865_vm2, %v1458_v22, 0.0 }
 0x80e   : > { %1460 = vadd.xlane.f32.xlu1 %v1459_v23 }
 0x89b   : > { %v1461_v19 = vpop.xlane.xlu1 %1460 }
 0x89c   : > { %v1462_v26 = vmul.f32 0.03125, %v1461_v19 }
 0x89e   : > { %v1463_v27 = vadd.f32 1e-12, %v1462_v26 }
 0x8a0   : > { %2264 = vrsqrt.f32 %v1463_v27  ;;  %v1798_v27 = vlaneseq (!%p2035_p8) }
 0x8aa   : > { %v2265_v28 = vpop.eup %2264 }
 0x8ab   : > { %v1465_v30 = vmul.f32 %v2265_v28, %v1457_v21  ;;  %v1799_v28 = vshrl.u32 (!%p2035_p8), %v1798_v27, 7 }
 0x8ad   : > { %v1472_v32 = vmul.f32 %v2021_v29, %v1465_v30  ;;  %v1742_v29 = vld [vmem:[%s2785_s5] sm:$0x1] (!%p2035_p8)  ;;  %v1800_v30 = vsub.s32 (!%p2035_p8), 0, %v1799_v28 }
 0x8af   : > { %v1479_v35 = vadd.f32 %v2022_v31, %v1472_v32 }
 0x8b1   : > { %v1484_v36 = vpack.c.bf16 %v1479_v35, %v1479_v35 }
 0x8b3   : > { %2153 = vmatmul.mubr.msk.bf16.vlgmr.msra.gmra.mrb[20].mxu0 %vm865_vm2, %v1484_v36 }
 0x8b4   : > { %2169 = vmatpush3.bf16.msra.mxu0 (!%p2035_p8), %v2270_v12  ;;  %2172 = vmatprep.mubr.msk.bf16.mxu0 (!%p2035_p8), %vm2327_vm8, %v2326_v13 }
 0x8b5   : > { %2170 = vmatprep.subr.bf16.mxu0 (!%p2035_p8), %v2326_v13 }
 0x8b8   : > { %2171 = vmatpush3.bf16.msra.mxu0 (!%p2035_p8), %v2271_v14 }
 0x986   : > { %v1541_v40 = vpop.f32.mrb[20].mxu0 }
 0x987   : > { %v1542_v41 = vadd.f32 %v2023_v39, %v1541_v40  ;;  %v2154_v42 = vpop.f32.mrb[21].mxu0 }
 0x988   : > { %v1544_v43 = vpop.f32.mrb[22].mxu0 }
 0x989   : > { %v1548_v44 = vmul.f32 0.044715, %v1542_v41  ;;  %v2155_v45 = vpop.f32.mrb[23].mxu0  ;;  %v1547_v17 = vmul.f32 0.5, %v1542_v41 }
 0x98b   : > { %v1549_v46 = vmul.f32 %v1548_v44, %v1542_v41 }
 0x98d   : > { %v1550_v47 = vmul.f32 %v1549_v46, %v1542_v41 }
 0x98f   : > { %v1551_v48 = vadd.f32 %v1550_v47, %v1542_v41 }
 0x991   : > { %v1552_v49 = vmul.f32 0.7978846, %v1551_v48 }
 0x993   : > { %2266 = vtanh.f32 %v1552_v49 }
 0x99d   : > { %v2267_v50 = vpop.eup %2266 }
 0x99e   : > { %v1554_v51 = vadd.f32 1.0, %v2267_v50 }
 0x9a0   : > { %v1555_v52 = vmul.f32 %v1554_v51, %v1547_v17 }
 0x9a2   : > { %v1564_v53 = vpack.c.bf16 %v1555_v52, %v1555_v52 }
 0x9a4   : > { %2165 = vmatmul.mubr.msk.bf16.vlgmr.msra.gmra.mrb[20].mxu1 %vm1596_vm7, %v1564_v53 }
 0x9a5   : > { %2180 = vmatprep.mubr.msk.bf16.mxu1 (!%p2035_p8), %vm2327_vm8, %v2326_v13  ;;  %2177 = vmatpush3.bf16.msra.mxu1 (!%p2035_p8), %v2272_v16 }
 0x9a6   : > { %2178 = vmatprep.subr.bf16.mxu1 (!%p2035_p8), %v2326_v13 }
 0x9a9   : > { %2179 = vmatpush3.bf16.msra.mxu1 (!%p2035_p8), %v2273_v18 }
 0xa77   : > { %v1634_v55 = vpop.f32.mrb[20].mxu1 }
 0xa78   : > { %v1635_v56 = vadd.f32 %v2027_v54, %v1634_v55  ;;  %v2166_v57 = vpop.f32.mrb[21].mxu1 }
 0xa79   : > { %v1637_v58 = vpop.f32.mrb[22].mxu1 }
 0xa7a   : > { %v2167_v59 = vpop.f32.mrb[23].mxu1  ;;  %v1640_v60 = vadd.f32 %v1635_v56, %v1479_v35 }
 0xa7c   : > { %v1643_v61 = vsel %vm865_vm2, %v1640_v60, 0.0 }
 0xa7d   : > { %1644 = vadd.xlane.f32.xlu0 %v1643_v61 }
 0xb0a   : > { %v1645_v62 = vpop.xlane.xlu0 %1644 }
 0xb0b   : > { %v1646_v63 = vmul.f32 0.03125, %v1645_v62 }
 0xb0d   : > { %v1647_v0 = vsub.f32 %v1640_v60, %v1646_v63 }
 0xb0f   : > { %v1648_v1 = vmul.f32 %v1647_v0, %v1647_v0 }
 0xb11   : > { %v1649_v2 = vsel %vm865_vm2, %v1648_v1, 0.0 }
 0xb12   : > { %1650 = vadd.xlane.f32.xlu0 %v1649_v2 }
 0xb9f   : > { %v1651_v3 = vpop.xlane.xlu0 %1650 }
 0xba0   : > { %v1652_v4 = vmul.f32 0.03125, %v1651_v3 }
 0xba2   : > { %v1653_v5 = vadd.f32 1e-12, %v1652_v4 }
 0xba4   : > { %2268 = vrsqrt.f32 %v1653_v5 }
 0xbae   : > { %v2269_v6 = vpop.eup %2268 }
 0xbaf   : > { %v1655_v8 = vmul.f32 %v2269_v6, %v1647_v0  ;;  %1674 = sbr.rel (%p2035_p8) target bundleno = 3443 (0xd73), region = 104 }
 0xbb1   : > { %v1662_v10 = vmul.f32 %v2033_v7, %v1655_v8 }
 0xbb3   : > { %v1669_v11 = vadd.f32 %v2034_v9, %v1662_v10 }
 0xbb5   : > { %1670 = vst.msk [vmem:[#allocation2] sm:$0xff] %vm865_vm2, %v1669_v11  ;;  %v1679_v15 = vpack.c.bf16 (!%p2035_p8), %v1669_v11, %v1669_v11 }
 0xbb7   : > { %2173 = vmatmul.mubr.msk.bf16.vlgmr.msra.gmra.mrb[0].mxu0 %vm865_vm2, %v1679_v15 }
 0xc8a   : > { %v1730_v21 = vpop.f32.mrb[0].mxu0 }
 0xc8b   : > { %v1731_v22 = vadd.f32 %v1730_v21, %v1680_v20  ;;  %v2174_v23 = vpop.f32.mrb[1].mxu0 }
 0xc8c   : > { %v1733_v24 = vpop.f32.mrb[2].mxu0 }
 0xc8d   : > { %2274 = vtanh.f32 %v1731_v22  ;;  %v2175_v25 = vpop.f32.mrb[3].mxu0 }
 0xc97   : > { %v2275_v19 = vpop.eup %2274 }
 0xc98   : > { %v1741_v26 = vpack.c.bf16 %v2275_v19, %v2275_v19 }
 0xc9a   : > { %2181 = vmatmul.mubr.msk.bf16.vlgmr.msra.gmra.mrb[0].mxu1 %vm865_vm2, %v1741_v26 }
 0xd6d   : > { %v1792_v31 = vpop.f32.mrb[0].mxu1 }
 0xd6e   : > { %v1793_v32 = vadd.f32 %v1792_v31, %v1742_v29  ;;  %v2182_v35 = vpop.f32.mrb[1].mxu1 }
 0xd6f   : > { %v1795_v36 = vpop.f32.mrb[2].mxu1 }
 0xd70   : > { %v1801_v34 = vrot.slane %v1793_v32, %v1800_v30  ;;  %v2183_v37 = vpop.f32.mrb[3].mxu1 }
 0xd72   : > { %1802 = vst [vmem:[%s2524_s9] sm:$0xff] %v1801_v34 }
 0xd73 PF: > { %s2786_s25 = sld [smem:[#allocation6_spill]]  ;;  %s2787_s0 = sld [smem:[#allocation4_spill]] }
 0xd74   : > { %s2788_s30 = sld [smem:[#allocation5_spill]]  ;;  %s2789_s20 = sld [smem:[#allocation7_spill]] }
 0xd75   : > { %s2790_s21 = sld [smem:[#allocation8_spill]] }
 0xd79   : > { %s29_s1 = sadd.s32 1, %s2786_s25  }
 0xd7a   : > { %p26_p9 = scmp.ge.s32.totalorder %s29_s1, 6  }
 0xd7c   :  { %28 = sbr.rel (!%p26_p9) target bundleno = 12 (0xc), region = 170 }

</bundles_post_ra>
